<compile_context>
chip_gen: v7x
topology: tpu7x:2x2x1
jax: 0.10.0
libtpu: 0.0.40
codegen_flags: <defaults>
</compile_context>

<pallas_src>
import functools

import jax
import jax.numpy as jnp
import numpy as np
from jax.experimental import pallas as pl
from jax.experimental.pallas import tpu as pltpu


def _fused_convnet_kernel(x_ref, w1_ref, b1_ref, w2_ref, b2_ref, m_ref, out_ref,
                          *, N, H, W, Cin, Cmid, Cout):
    # x_ref  : (N, Cin, HW)     packed per-image channel planes (lane = HW)
    # w1_ref : (Cmid, 9*Cin)    lane-dense, im2col-ordered (t*Cin + ci)
    # b1_ref : (Cmid, 1)
    # w2_ref : (Cout, 9*Cmid)
    # b2_ref : (Cout, 1)
    # m_ref  : (9, HW)          {0,1} validity of each 3x3 tap per pixel
    # out_ref: (N, Cout, HW)    lane-dense output
    HW = H * W

    masks = m_ref[...]            # (9, HW), loaded once
    w1 = w1_ref[...]              # (Cmid, 9*Cin)
    b1 = b1_ref[...]              # (Cmid, 1)
    w2 = w2_ref[...]              # (Cout, 9*Cmid)
    b2 = b2_ref[...]              # (Cout, 1)

    def conv3x3(x, w, b):
        # x: (cin, HW) f32.  Block-level roll + mask per tap (XLU + VPU), then
        # one MXU contraction (cout, 9*cin) @ (9*cin, HW), bias added once.
        taps = []
        for kh in range(3):
            for kw in range(3):
                t = kh * 3 + kw
                # shifted[p] = x_flat[p + d],  d = (kh-1)*W + (kw-1)
                shift = (-((kh - 1) * W + (kw - 1))) % HW
                tap = pltpu.roll(x, shift, 1) if shift else x
                if (kh != 1) or (kw != 1):
                    tap = tap * masks[t:t + 1, :]     # zero out-of-image taps
                taps.append(tap)
        im2col = jnp.concatenate(taps, axis=0)        # (9*cin, HW)
        y = jnp.dot(w, im2col, preferred_element_type=jnp.float32)
        return y + b                                  # (cout, HW)

    # Batch is tiny & static: unrolled Python loop inside a single invocation.
    for n in range(N):
        x_n = x_ref[n].astype(jnp.float32)                        # (Cin, HW)
        # Layer 1 ("resnet"): conv3x3 + ReLU.  Intermediate stays on-chip.
        mid = jnp.maximum(conv3x3(x_n, w1, b1), 0.0)              # (Cmid, HW)
        # Layer 2 ("myNet"): conv3x3, no activation.
        out_ref[n] = conv3x3(mid, w2, b2).astype(out_ref.dtype)   # (Cout, HW)


def _tap_masks(H, W):
    """(9, H*W) float32 {0,1}: validity of each 3x3 tap at each output pixel."""
    hh = np.arange(H)[:, None]
    ww = np.arange(W)[None, :]
    m = np.zeros((9, H * W), np.float32)
    for kh in range(3):
        for kw in range(3):
            valid = ((hh + kh - 1 >= 0) & (hh + kh - 1 < H) &
                     (ww + kw - 1 >= 0) & (ww + kw - 1 < W))
            m[kh * 3 + kw] = valid.astype(np.float32).reshape(-1)
    return jnp.asarray(m)


def conv_net_forward(x_nchw, params):
    """Equivalent of convNet.forward: x -> resnet(x) -> myNet(x). NCHW in/out."""
    N, Cin, H, W = x_nchw.shape
    HW = H * W
    Cmid = params["w1"].shape[-1]
    Cout = params["w2"].shape[-1]

    # Layout prep (tiny, on <1 KiB weights): im2col-ordered, lane-dense 2-D.
    x_k = x_nchw.reshape(N, Cin, HW)
    w1 = jnp.transpose(params["w1"].reshape(9, Cin, Cmid),
                       (2, 0, 1)).reshape(Cmid, 9 * Cin)   # (Cmid, 9*Cin)
    w2 = jnp.transpose(params["w2"].reshape(9, Cmid, Cout),
                       (2, 0, 1)).reshape(Cout, 9 * Cmid)  # (Cout, 9*Cmid)
    b1 = params["b1"].reshape(Cmid, 1)
    b2 = params["b2"].reshape(Cout, 1)
    masks = _tap_masks(H, W)                               # (9, HW)

    kernel = functools.partial(_fused_convnet_kernel, N=N, H=H, W=W,
                               Cin=Cin, Cmid=Cmid, Cout=Cout)
    vmem = pl.BlockSpec(memory_space=pltpu.MemorySpace.VMEM)
    out = pl.pallas_call(
        kernel,
        out_shape=jax.ShapeDtypeStruct((N, Cout, HW), x_nchw.dtype),
        in_specs=[vmem, vmem, vmem, vmem, vmem, vmem],
        out_specs=vmem,
    )(x_k, w1, b1, w2, b2, masks)
    return out.reshape(N, Cout, H, W)


def init_params(key, cin=3, cmid=8, cout=3):
    k1, k2, k3, k4 = jax.random.split(key, 4)
    fan1 = 3 * 3 * cin
    fan2 = 3 * 3 * cmid
    return {
        "w1": jax.random.normal(k1, (3, 3, cin, cmid), jnp.float32)
              * np.sqrt(2.0 / fan1),
        "b1": 0.01 * jax.random.normal(k2, (cmid,), jnp.float32),
        "w2": jax.random.normal(k3, (3, 3, cmid, cout), jnp.float32)
              * np.sqrt(2.0 / fan2),
        "b2": 0.01 * jax.random.normal(k4, (cout,), jnp.float32),
    }


def _reference_forward(x_nchw, params):
    """Plain-JAX reference (lax conv) for correctness checking."""
    x = jnp.transpose(x_nchw, (0, 2, 3, 1))

    def conv(x, w, b, relu):
        y = jax.lax.conv_general_dilated(
            x, w, window_strides=(1, 1), padding="SAME",
            dimension_numbers=("NHWC", "HWIO", "NHWC"))
        y = y + b[None, None, None, :]
        return jnp.maximum(y, 0.0) if relu else y

    x = conv(x, params["w1"], params["b1"], True)
    x = conv(x, params["w2"], params["b2"], False)
    return jnp.transpose(x, (0, 3, 1, 2))


if __name__ == "__main__":
    key = jax.random.PRNGKey(0)
    kx, kp = jax.random.split(key)

    # Normalized-RGB-image-like input, PyTorch NCHW convention.
    x = jax.random.normal(kx, (2, 3, 16, 16), jnp.float32)
    params = init_params(kp)

    out = jax.block_until_ready(conv_net_forward(x, params))
    ref = jax.block_until_ready(_reference_forward(x, params))

    assert out.shape == (2, 3, 16, 16)
    np.testing.assert_allclose(np.asarray(out), np.asarray(ref),
                               rtol=1e-4, atol=1e-4)
    print("KERNEL_OK")
</pallas_src>

<mosaic_0001>
module attributes {stable_mosaic.version = 11 : i64} {
  func.func @_fused_convnet_kernel(%arg0: memref<2x3x256xf32, #tpu.memory_space<vmem>>, %arg1: memref<8x27xf32, #tpu.memory_space<vmem>>, %arg2: memref<8x1xf32, #tpu.memory_space<vmem>>, %arg3: memref<3x72xf32, #tpu.memory_space<vmem>>, %arg4: memref<3x1xf32, #tpu.memory_space<vmem>>, %arg5: memref<9x256xf32, #tpu.memory_space<vmem>>, %arg6: memref<2x3x256xf32, #tpu.memory_space<vmem>>) attributes {dimension_semantics = [], scalar_prefetch = 0 : i64, scratch_operands = 0 : i64, tpu.core_type = #tpu.core_type<tc>} {
    %c0 = arith.constant 0 : index
    %c0_0 = arith.constant 0 : index
    %0 = vector.load %arg5[%c0, %c0_0] : memref<9x256xf32, #tpu.memory_space<vmem>>, vector<9x256xf32>
    %c0_1 = arith.constant 0 : index
    %c0_2 = arith.constant 0 : index
    %1 = vector.load %arg1[%c0_1, %c0_2] : memref<8x27xf32, #tpu.memory_space<vmem>>, vector<8x27xf32>
    %c0_3 = arith.constant 0 : index
    %c0_4 = arith.constant 0 : index
    %2 = vector.load %arg2[%c0_3, %c0_4] : memref<8x1xf32, #tpu.memory_space<vmem>>, vector<8x1xf32>
    %c0_5 = arith.constant 0 : index
    %c0_6 = arith.constant 0 : index
    %3 = vector.load %arg3[%c0_5, %c0_6] : memref<3x72xf32, #tpu.memory_space<vmem>>, vector<3x72xf32>
    %c0_7 = arith.constant 0 : index
    %c0_8 = arith.constant 0 : index
    %4 = vector.load %arg4[%c0_7, %c0_8] : memref<3x1xf32, #tpu.memory_space<vmem>>, vector<3x1xf32>
    %c0_9 = arith.constant 0 : index
    %c0_10 = arith.constant 0 : index
    %c0_11 = arith.constant 0 : index
    %5 = vector.load %arg0[%c0_9, %c0_10, %c0_11] : memref<2x3x256xf32, #tpu.memory_space<vmem>>, vector<1x3x256xf32>
    %6 = vector.shape_cast %5 : vector<1x3x256xf32> to vector<3x256xf32>
    %c17_i32 = arith.constant 17 : i32
    %7 = tpu.dynamic_rotate %6 by %c17_i32 dim 1 : vector<3x256xf32>, i32 -> vector<3x256xf32>
    %8 = vector.extract_strided_slice %0 {offsets = [0, 0], sizes = [1, 256], strides = [1, 1]} : vector<9x256xf32> to vector<1x256xf32>
    %9 = vector.broadcast %8 : vector<1x256xf32> to vector<3x256xf32>
    %10 = arith.mulf %7, %9 : vector<3x256xf32>
    %c16_i32 = arith.constant 16 : i32
    %11 = tpu.dynamic_rotate %6 by %c16_i32 dim 1 : vector<3x256xf32>, i32 -> vector<3x256xf32>
    %12 = vector.extract_strided_slice %0 {offsets = [1, 0], sizes = [1, 256], strides = [1, 1]} : vector<9x256xf32> to vector<1x256xf32>
    %13 = vector.broadcast %12 : vector<1x256xf32> to vector<3x256xf32>
    %14 = arith.mulf %11, %13 : vector<3x256xf32>
    %c15_i32 = arith.constant 15 : i32
    %15 = tpu.dynamic_rotate %6 by %c15_i32 dim 1 : vector<3x256xf32>, i32 -> vector<3x256xf32>
    %16 = vector.extract_strided_slice %0 {offsets = [2, 0], sizes = [1, 256], strides = [1, 1]} : vector<9x256xf32> to vector<1x256xf32>
    %17 = vector.broadcast %16 : vector<1x256xf32> to vector<3x256xf32>
    %18 = arith.mulf %15, %17 : vector<3x256xf32>
    %c1_i32 = arith.constant 1 : i32
    %19 = tpu.dynamic_rotate %6 by %c1_i32 dim 1 : vector<3x256xf32>, i32 -> vector<3x256xf32>
    %20 = vector.extract_strided_slice %0 {offsets = [3, 0], sizes = [1, 256], strides = [1, 1]} : vector<9x256xf32> to vector<1x256xf32>
    %21 = vector.broadcast %20 : vector<1x256xf32> to vector<3x256xf32>
    %22 = arith.mulf %19, %21 : vector<3x256xf32>
    %c255_i32 = arith.constant 255 : i32
    %23 = tpu.dynamic_rotate %6 by %c255_i32 dim 1 : vector<3x256xf32>, i32 -> vector<3x256xf32>
    %24 = vector.extract_strided_slice %0 {offsets = [5, 0], sizes = [1, 256], strides = [1, 1]} : vector<9x256xf32> to vector<1x256xf32>
    %25 = vector.broadcast %24 : vector<1x256xf32> to vector<3x256xf32>
    %26 = arith.mulf %23, %25 : vector<3x256xf32>
    %c241_i32 = arith.constant 241 : i32
    %27 = tpu.dynamic_rotate %6 by %c241_i32 dim 1 : vector<3x256xf32>, i32 -> vector<3x256xf32>
    %28 = vector.extract_strided_slice %0 {offsets = [6, 0], sizes = [1, 256], strides = [1, 1]} : vector<9x256xf32> to vector<1x256xf32>
    %29 = vector.broadcast %28 : vector<1x256xf32> to vector<3x256xf32>
    %30 = arith.mulf %27, %29 : vector<3x256xf32>
    %c240_i32 = arith.constant 240 : i32
    %31 = tpu.dynamic_rotate %6 by %c240_i32 dim 1 : vector<3x256xf32>, i32 -> vector<3x256xf32>
    %32 = vector.extract_strided_slice %0 {offsets = [7, 0], sizes = [1, 256], strides = [1, 1]} : vector<9x256xf32> to vector<1x256xf32>
    %33 = vector.broadcast %32 : vector<1x256xf32> to vector<3x256xf32>
    %34 = arith.mulf %31, %33 : vector<3x256xf32>
    %c239_i32 = arith.constant 239 : i32
    %35 = tpu.dynamic_rotate %6 by %c239_i32 dim 1 : vector<3x256xf32>, i32 -> vector<3x256xf32>
    %36 = vector.extract_strided_slice %0 {offsets = [8, 0], sizes = [1, 256], strides = [1, 1]} : vector<9x256xf32> to vector<1x256xf32>
    %37 = vector.broadcast %36 : vector<1x256xf32> to vector<3x256xf32>
    %38 = arith.mulf %35, %37 : vector<3x256xf32>
    %39 = tpu.concatenate %10, %14, %18, %22, %6, %26, %30, %34, %38 in 0 : vector<3x256xf32>, vector<3x256xf32>, vector<3x256xf32>, vector<3x256xf32>, vector<3x256xf32>, vector<3x256xf32>, vector<3x256xf32>, vector<3x256xf32>, vector<3x256xf32> -> vector<27x256xf32>
    %cst = arith.constant dense<0.000000e+00> : vector<8x256xf32>
    %40 = tpu.matmul %1, %39, %cst {dimension_numbers = #tpu.dot_dimension_numbers<[1], [0], [0], [1], [0, 0, 1, 1], [], []>} : vector<8x27xf32>, vector<27x256xf32>, vector<8x256xf32> -> vector<8x256xf32>
    %41 = vector.broadcast %2 : vector<8x1xf32> to vector<8x256xf32>
    %42 = arith.addf %40, %41 : vector<8x256xf32>
    %cst_12 = arith.constant 0.000000e+00 : f32
    %43 = vector.broadcast %cst_12 : f32 to vector<8x256xf32>
    %44 = arith.maximumf %42, %43 : vector<8x256xf32>
    %c17_i32_13 = arith.constant 17 : i32
    %45 = tpu.dynamic_rotate %44 by %c17_i32_13 dim 1 : vector<8x256xf32>, i32 -> vector<8x256xf32>
    %46 = vector.extract_strided_slice %0 {offsets = [0, 0], sizes = [1, 256], strides = [1, 1]} : vector<9x256xf32> to vector<1x256xf32>
    %47 = vector.broadcast %46 : vector<1x256xf32> to vector<8x256xf32>
    %48 = arith.mulf %45, %47 : vector<8x256xf32>
    %c16_i32_14 = arith.constant 16 : i32
    %49 = tpu.dynamic_rotate %44 by %c16_i32_14 dim 1 : vector<8x256xf32>, i32 -> vector<8x256xf32>
    %50 = vector.extract_strided_slice %0 {offsets = [1, 0], sizes = [1, 256], strides = [1, 1]} : vector<9x256xf32> to vector<1x256xf32>
    %51 = vector.broadcast %50 : vector<1x256xf32> to vector<8x256xf32>
    %52 = arith.mulf %49, %51 : vector<8x256xf32>
    %c15_i32_15 = arith.constant 15 : i32
    %53 = tpu.dynamic_rotate %44 by %c15_i32_15 dim 1 : vector<8x256xf32>, i32 -> vector<8x256xf32>
    %54 = vector.extract_strided_slice %0 {offsets = [2, 0], sizes = [1, 256], strides = [1, 1]} : vector<9x256xf32> to vector<1x256xf32>
    %55 = vector.broadcast %54 : vector<1x256xf32> to vector<8x256xf32>
    %56 = arith.mulf %53, %55 : vector<8x256xf32>
    %c1_i32_16 = arith.constant 1 : i32
    %57 = tpu.dynamic_rotate %44 by %c1_i32_16 dim 1 : vector<8x256xf32>, i32 -> vector<8x256xf32>
    %58 = vector.extract_strided_slice %0 {offsets = [3, 0], sizes = [1, 256], strides = [1, 1]} : vector<9x256xf32> to vector<1x256xf32>
    %59 = vector.broadcast %58 : vector<1x256xf32> to vector<8x256xf32>
    %60 = arith.mulf %57, %59 : vector<8x256xf32>
    %c255_i32_17 = arith.constant 255 : i32
    %61 = tpu.dynamic_rotate %44 by %c255_i32_17 dim 1 : vector<8x256xf32>, i32 -> vector<8x256xf32>
    %62 = vector.extract_strided_slice %0 {offsets = [5, 0], sizes = [1, 256], strides = [1, 1]} : vector<9x256xf32> to vector<1x256xf32>
    %63 = vector.broadcast %62 : vector<1x256xf32> to vector<8x256xf32>
    %64 = arith.mulf %61, %63 : vector<8x256xf32>
    %c241_i32_18 = arith.constant 241 : i32
    %65 = tpu.dynamic_rotate %44 by %c241_i32_18 dim 1 : vector<8x256xf32>, i32 -> vector<8x256xf32>
    %66 = vector.extract_strided_slice %0 {offsets = [6, 0], sizes = [1, 256], strides = [1, 1]} : vector<9x256xf32> to vector<1x256xf32>
    %67 = vector.broadcast %66 : vector<1x256xf32> to vector<8x256xf32>
    %68 = arith.mulf %65, %67 : vector<8x256xf32>
    %c240_i32_19 = arith.constant 240 : i32
    %69 = tpu.dynamic_rotate %44 by %c240_i32_19 dim 1 : vector<8x256xf32>, i32 -> vector<8x256xf32>
    %70 = vector.extract_strided_slice %0 {offsets = [7, 0], sizes = [1, 256], strides = [1, 1]} : vector<9x256xf32> to vector<1x256xf32>
    %71 = vector.broadcast %70 : vector<1x256xf32> to vector<8x256xf32>
    %72 = arith.mulf %69, %71 : vector<8x256xf32>
    %c239_i32_20 = arith.constant 239 : i32
    %73 = tpu.dynamic_rotate %44 by %c239_i32_20 dim 1 : vector<8x256xf32>, i32 -> vector<8x256xf32>
    %74 = vector.extract_strided_slice %0 {offsets = [8, 0], sizes = [1, 256], strides = [1, 1]} : vector<9x256xf32> to vector<1x256xf32>
    %75 = vector.broadcast %74 : vector<1x256xf32> to vector<8x256xf32>
    %76 = arith.mulf %73, %75 : vector<8x256xf32>
    %77 = tpu.concatenate %48, %52, %56, %60, %44, %64, %68, %72, %76 in 0 : vector<8x256xf32>, vector<8x256xf32>, vector<8x256xf32>, vector<8x256xf32>, vector<8x256xf32>, vector<8x256xf32>, vector<8x256xf32>, vector<8x256xf32>, vector<8x256xf32> -> vector<72x256xf32>
    %cst_21 = arith.constant dense<0.000000e+00> : vector<3x256xf32>
    %78 = tpu.matmul %3, %77, %cst_21 {dimension_numbers = #tpu.dot_dimension_numbers<[1], [0], [0], [1], [0, 0, 1, 1], [], []>} : vector<3x72xf32>, vector<72x256xf32>, vector<3x256xf32> -> vector<3x256xf32>
    %79 = vector.broadcast %4 : vector<3x1xf32> to vector<3x256xf32>
    %80 = arith.addf %78, %79 : vector<3x256xf32>
    %c0_22 = arith.constant 0 : index
    %c0_23 = arith.constant 0 : index
    %c0_24 = arith.constant 0 : index
    %81 = vector.load %arg6[%c0_22, %c0_23, %c0_24] : memref<2x3x256xf32, #tpu.memory_space<vmem>>, vector<1x3x256xf32>
    %82 = vector.shape_cast %81 : vector<1x3x256xf32> to vector<3x256xf32>
    %83 = vector.shape_cast %80 : vector<3x256xf32> to vector<1x3x256xf32>
    tpu.vector_store %arg6[%c0_22, %c0_23, %c0_24], %83 {strides = array<i32>} : memref<2x3x256xf32, #tpu.memory_space<vmem>>, vector<1x3x256xf32>,
    %c1 = arith.constant 1 : index
    %c0_25 = arith.constant 0 : index
    %c0_26 = arith.constant 0 : index
    %84 = vector.load %arg0[%c1, %c0_25, %c0_26] : memref<2x3x256xf32, #tpu.memory_space<vmem>>, vector<1x3x256xf32>
    %85 = vector.shape_cast %84 : vector<1x3x256xf32> to vector<3x256xf32>
    %c17_i32_27 = arith.constant 17 : i32
    %86 = tpu.dynamic_rotate %85 by %c17_i32_27 dim 1 : vector<3x256xf32>, i32 -> vector<3x256xf32>
    %87 = vector.extract_strided_slice %0 {offsets = [0, 0], sizes = [1, 256], strides = [1, 1]} : vector<9x256xf32> to vector<1x256xf32>
    %88 = vector.broadcast %87 : vector<1x256xf32> to vector<3x256xf32>
    %89 = arith.mulf %86, %88 : vector<3x256xf32>
    %c16_i32_28 = arith.constant 16 : i32
    %90 = tpu.dynamic_rotate %85 by %c16_i32_28 dim 1 : vector<3x256xf32>, i32 -> vector<3x256xf32>
    %91 = vector.extract_strided_slice %0 {offsets = [1, 0], sizes = [1, 256], strides = [1, 1]} : vector<9x256xf32> to vector<1x256xf32>
    %92 = vector.broadcast %91 : vector<1x256xf32> to vector<3x256xf32>
    %93 = arith.mulf %90, %92 : vector<3x256xf32>
    %c15_i32_29 = arith.constant 15 : i32
    %94 = tpu.dynamic_rotate %85 by %c15_i32_29 dim 1 : vector<3x256xf32>, i32 -> vector<3x256xf32>
    %95 = vector.extract_strided_slice %0 {offsets = [2, 0], sizes = [1, 256], strides = [1, 1]} : vector<9x256xf32> to vector<1x256xf32>
    %96 = vector.broadcast %95 : vector<1x256xf32> to vector<3x256xf32>
    %97 = arith.mulf %94, %96 : vector<3x256xf32>
    %c1_i32_30 = arith.constant 1 : i32
    %98 = tpu.dynamic_rotate %85 by %c1_i32_30 dim 1 : vector<3x256xf32>, i32 -> vector<3x256xf32>
    %99 = vector.extract_strided_slice %0 {offsets = [3, 0], sizes = [1, 256], strides = [1, 1]} : vector<9x256xf32> to vector<1x256xf32>
    %100 = vector.broadcast %99 : vector<1x256xf32> to vector<3x256xf32>
    %101 = arith.mulf %98, %100 : vector<3x256xf32>
    %c255_i32_31 = arith.constant 255 : i32
    %102 = tpu.dynamic_rotate %85 by %c255_i32_31 dim 1 : vector<3x256xf32>, i32 -> vector<3x256xf32>
    %103 = vector.extract_strided_slice %0 {offsets = [5, 0], sizes = [1, 256], strides = [1, 1]} : vector<9x256xf32> to vector<1x256xf32>
    %104 = vector.broadcast %103 : vector<1x256xf32> to vector<3x256xf32>
    %105 = arith.mulf %102, %104 : vector<3x256xf32>
    %c241_i32_32 = arith.constant 241 : i32
    %106 = tpu.dynamic_rotate %85 by %c241_i32_32 dim 1 : vector<3x256xf32>, i32 -> vector<3x256xf32>
    %107 = vector.extract_strided_slice %0 {offsets = [6, 0], sizes = [1, 256], strides = [1, 1]} : vector<9x256xf32> to vector<1x256xf32>
    %108 = vector.broadcast %107 : vector<1x256xf32> to vector<3x256xf32>
    %109 = arith.mulf %106, %108 : vector<3x256xf32>
    %c240_i32_33 = arith.constant 240 : i32
    %110 = tpu.dynamic_rotate %85 by %c240_i32_33 dim 1 : vector<3x256xf32>, i32 -> vector<3x256xf32>
    %111 = vector.extract_strided_slice %0 {offsets = [7, 0], sizes = [1, 256], strides = [1, 1]} : vector<9x256xf32> to vector<1x256xf32>
    %112 = vector.broadcast %111 : vector<1x256xf32> to vector<3x256xf32>
    %113 = arith.mulf %110, %112 : vector<3x256xf32>
    %c239_i32_34 = arith.constant 239 : i32
    %114 = tpu.dynamic_rotate %85 by %c239_i32_34 dim 1 : vector<3x256xf32>, i32 -> vector<3x256xf32>
    %115 = vector.extract_strided_slice %0 {offsets = [8, 0], sizes = [1, 256], strides = [1, 1]} : vector<9x256xf32> to vector<1x256xf32>
    %116 = vector.broadcast %115 : vector<1x256xf32> to vector<3x256xf32>
    %117 = arith.mulf %114, %116 : vector<3x256xf32>
    %118 = tpu.concatenate %89, %93, %97, %101, %85, %105, %109, %113, %117 in 0 : vector<3x256xf32>, vector<3x256xf32>, vector<3x256xf32>, vector<3x256xf32>, vector<3x256xf32>, vector<3x256xf32>, vector<3x256xf32>, vector<3x256xf32>, vector<3x256xf32> -> vector<27x256xf32>
    %cst_35 = arith.constant dense<0.000000e+00> : vector<8x256xf32>
    %119 = tpu.matmul %1, %118, %cst_35 {dimension_numbers = #tpu.dot_dimension_numbers<[1], [0], [0], [1], [0, 0, 1, 1], [], []>} : vector<8x27xf32>, vector<27x256xf32>, vector<8x256xf32> -> vector<8x256xf32>
    %120 = vector.broadcast %2 : vector<8x1xf32> to vector<8x256xf32>
    %121 = arith.addf %119, %120 : vector<8x256xf32>
    %cst_36 = arith.constant 0.000000e+00 : f32
    %122 = vector.broadcast %cst_36 : f32 to vector<8x256xf32>
    %123 = arith.maximumf %121, %122 : vector<8x256xf32>
    %c17_i32_37 = arith.constant 17 : i32
    %124 = tpu.dynamic_rotate %123 by %c17_i32_37 dim 1 : vector<8x256xf32>, i32 -> vector<8x256xf32>
    %125 = vector.extract_strided_slice %0 {offsets = [0, 0], sizes = [1, 256], strides = [1, 1]} : vector<9x256xf32> to vector<1x256xf32>
    %126 = vector.broadcast %125 : vector<1x256xf32> to vector<8x256xf32>
    %127 = arith.mulf %124, %126 : vector<8x256xf32>
    %c16_i32_38 = arith.constant 16 : i32
    %128 = tpu.dynamic_rotate %123 by %c16_i32_38 dim 1 : vector<8x256xf32>, i32 -> vector<8x256xf32>
    %129 = vector.extract_strided_slice %0 {offsets = [1, 0], sizes = [1, 256], strides = [1, 1]} : vector<9x256xf32> to vector<1x256xf32>
    %130 = vector.broadcast %129 : vector<1x256xf32> to vector<8x256xf32>
    %131 = arith.mulf %128, %130 : vector<8x256xf32>
    %c15_i32_39 = arith.constant 15 : i32
    %132 = tpu.dynamic_rotate %123 by %c15_i32_39 dim 1 : vector<8x256xf32>, i32 -> vector<8x256xf32>
    %133 = vector.extract_strided_slice %0 {offsets = [2, 0], sizes = [1, 256], strides = [1, 1]} : vector<9x256xf32> to vector<1x256xf32>
    %134 = vector.broadcast %133 : vector<1x256xf32> to vector<8x256xf32>
    %135 = arith.mulf %132, %134 : vector<8x256xf32>
    %c1_i32_40 = arith.constant 1 : i32
    %136 = tpu.dynamic_rotate %123 by %c1_i32_40 dim 1 : vector<8x256xf32>, i32 -> vector<8x256xf32>
    %137 = vector.extract_strided_slice %0 {offsets = [3, 0], sizes = [1, 256], strides = [1, 1]} : vector<9x256xf32> to vector<1x256xf32>
    %138 = vector.broadcast %137 : vector<1x256xf32> to vector<8x256xf32>
    %139 = arith.mulf %136, %138 : vector<8x256xf32>
    %c255_i32_41 = arith.constant 255 : i32
    %140 = tpu.dynamic_rotate %123 by %c255_i32_41 dim 1 : vector<8x256xf32>, i32 -> vector<8x256xf32>
    %141 = vector.extract_strided_slice %0 {offsets = [5, 0], sizes = [1, 256], strides = [1, 1]} : vector<9x256xf32> to vector<1x256xf32>
    %142 = vector.broadcast %141 : vector<1x256xf32> to vector<8x256xf32>
    %143 = arith.mulf %140, %142 : vector<8x256xf32>
    %c241_i32_42 = arith.constant 241 : i32
    %144 = tpu.dynamic_rotate %123 by %c241_i32_42 dim 1 : vector<8x256xf32>, i32 -> vector<8x256xf32>
    %145 = vector.extract_strided_slice %0 {offsets = [6, 0], sizes = [1, 256], strides = [1, 1]} : vector<9x256xf32> to vector<1x256xf32>
    %146 = vector.broadcast %145 : vector<1x256xf32> to vector<8x256xf32>
    %147 = arith.mulf %144, %146 : vector<8x256xf32>
    %c240_i32_43 = arith.constant 240 : i32
    %148 = tpu.dynamic_rotate %123 by %c240_i32_43 dim 1 : vector<8x256xf32>, i32 -> vector<8x256xf32>
    %149 = vector.extract_strided_slice %0 {offsets = [7, 0], sizes = [1, 256], strides = [1, 1]} : vector<9x256xf32> to vector<1x256xf32>
    %150 = vector.broadcast %149 : vector<1x256xf32> to vector<8x256xf32>
    %151 = arith.mulf %148, %150 : vector<8x256xf32>
    %c239_i32_44 = arith.constant 239 : i32
    %152 = tpu.dynamic_rotate %123 by %c239_i32_44 dim 1 : vector<8x256xf32>, i32 -> vector<8x256xf32>
    %153 = vector.extract_strided_slice %0 {offsets = [8, 0], sizes = [1, 256], strides = [1, 1]} : vector<9x256xf32> to vector<1x256xf32>
    %154 = vector.broadcast %153 : vector<1x256xf32> to vector<8x256xf32>
    %155 = arith.mulf %152, %154 : vector<8x256xf32>
    %156 = tpu.concatenate %127, %131, %135, %139, %123, %143, %147, %151, %155 in 0 : vector<8x256xf32>, vector<8x256xf32>, vector<8x256xf32>, vector<8x256xf32>, vector<8x256xf32>, vector<8x256xf32>, vector<8x256xf32>, vector<8x256xf32>, vector<8x256xf32> -> vector<72x256xf32>
    %cst_45 = arith.constant dense<0.000000e+00> : vector<3x256xf32>
    %157 = tpu.matmul %3, %156, %cst_45 {dimension_numbers = #tpu.dot_dimension_numbers<[1], [0], [0], [1], [0, 0, 1, 1], [], []>} : vector<3x72xf32>, vector<72x256xf32>, vector<3x256xf32> -> vector<3x256xf32>
    %158 = vector.broadcast %4 : vector<3x1xf32> to vector<3x256xf32>
    %159 = arith.addf %157, %158 : vector<3x256xf32>
    %c1_46 = arith.constant 1 : index
    %c0_47 = arith.constant 0 : index
    %c0_48 = arith.constant 0 : index
    %160 = vector.load %arg6[%c1_46, %c0_47, %c0_48] : memref<2x3x256xf32, #tpu.memory_space<vmem>>, vector<1x3x256xf32>
    %161 = vector.shape_cast %160 : vector<1x3x256xf32> to vector<3x256xf32>
    %162 = vector.shape_cast %159 : vector<3x256xf32> to vector<1x3x256xf32>
    tpu.vector_store %arg6[%c1_46, %c0_47, %c0_48], %162 {strides = array<i32>} : memref<2x3x256xf32, #tpu.memory_space<vmem>>, vector<1x3x256xf32>,
    return
  }
}

</mosaic_0001>

<bundles_post_ra>
// kernel: tpu_custom_call.1
= control target key start
LH: loop header
LB: loop body
LE: loop exit
PB: predicated region body
PF: predicated region fallthrough
CT: control target
= control target key end

     0   :  { %s894_s23 = smov 1   ;;  %s895_s24 = smov 15   ;;  %v901_v4 = vmov 0.0   ;;  %v903_v5 = vmov 0   ;;  %v39_v9 = vlaneseq  ;;  %vm217_vm2 = vcmask 1040384   ;;  %s1470_s0 = inlined_call_operand.vmem [shape: f32[2,3,256], index: 0, kind: input, shape index: {}]   ;;  %s1471_s2 = inlined_call_operand.vmem [shape: f32[8,1], index: 2, kind: input, shape index: {}]   ;;  %s1472_s5 = inlined_call_operand.vmem [shape: f32[9,256], index: 5, kind: input, shape index: {}]   ;;  %s1473_s1 = inlined_call_operand.vmem [shape: f32[8,27], index: 1, kind: input, shape index: {}]   ;;  %s1474_s4 = inlined_call_operand.vmem [shape: f32[3,1], index: 4, kind: input, shape index: {}]   ;;  %s1475_s3 = inlined_call_operand.vmem [shape: f32[3,72], index: 3, kind: input, shape index: {}]   ;;  %s1476_s6 = inlined_call_operand.vmem [shape: f32[2,3,256], index: 6, kind: output, shape index: {}]  }
   0x1   :  { %v943_v0 = vld [vmem:[%s1470_s0] sm:$0x77]  ;;  %v954_v2 = vld [vmem:[%s1470_s0 + $0x8] sm:$0x77]  ;;  %s896_s27 = smov 16   ;;  %s897_s0 = smov 127   ;;  %311 = vmatprep.mubr.f32.mxu1 %v901_v4  ;;  %660 = vmatprep.mubr.f32.mxu0 %v901_v4 }
   0x2   :  { %88 = vrot.lane.b32.xlu1 %v943_v0, %s894_s23  ;;  %71 = vrot.lane.b32.xlu0 %v943_v0, %s895_s24  ;;  %v33_v1 = vcombine.high %v943_v0, %v943_v0  ;;  %v472_v3 = vcombine.high %v954_v2, %v954_v2  ;;  %s898_s28 = smov 17   ;;  %s899_s29 = smov 113   ;;  %v28_v6 = vld [vmem:[%s1471_s2] sm:$0xff]  ;;  %v1007_v12 = vshrl.u32 %v39_v9, 7  ;;  %v1009_v15 = vand.u32 127, %v39_v9  ;;  %v1021_v21 = vld [vmem:[%s1472_s5 + $0x8] sm:$0xff] }
   0x3   :  { %s900_s30 = smov 112   ;;  %s902_s7 = smov 111   ;;  %889 = vset.pattern.permute.xlu0 %v903_v5  ;;  %v1015_v17 = vld [vmem:[%s1472_s5] sm:$0xff]  ;;  %v191_v35 = vcombine.low %v943_v0, %v943_v0  ;;  %v556_v36 = vcombine.low %v954_v2, %v954_v2  ;;  %vm220_vm5 = vcmask 1043456   ;;  %vm223_vm7 = vcmask 1046528  }
   0x4   :  { %v97_v16 = vsub.s32 3, %v1007_v12  ;;  %v80_v18 = vsub.s32 2, %v1007_v12  ;;  %vm92_vm0 = vcmp.lt.s32.totalorder %v1009_v15, 1  ;;  %vm75_vm1 = vcmp.lt.s32.totalorder %v1009_v15, 15 }
   0x5   :  { %v63_v23 = vsub.s32 1, %v1007_v12  ;;  %v114_v29 = vsub.s32 5, %v1007_v12  ;;  %vm58_vm3 = vcmp.lt.s32.totalorder %v1009_v15, 16  ;;  %v46_v34 = vsub.s32 0, %v1007_v12 }
   0x6   :  { %90 = vrot.lane.b32.xlu1 %v33_v1, %s894_s23  ;;  %73 = vrot.lane.b32.xlu0 %v33_v1, %s895_s24  ;;  %v1026_v22 = vrot.slane %v1015_v17, %v97_v16  ;;  %v1030_v24 = vrot.slane %v1021_v21, %v97_v16  ;;  %v1033_v25 = vrot.slane %v1015_v17, %v80_v18  ;;  %vm109_vm4 = vcmp.lt.s32.totalorder %v1009_v15, 127 }
   0x7   :  { %v1036_v26 = vrot.slane %v1021_v21, %v80_v18  ;;  %v1062_v43 = vrot.slane %v1015_v17, %v63_v23  ;;  %v1065_v44 = vrot.slane %v1021_v21, %v63_v23  ;;  %v1069_v45 = vrot.slane %v1015_v17, %v114_v29 }
   0x8   :  { %v1076_v48 = vrot.slane %v1021_v21, %v114_v29  ;;  %vm41_vm6 = vcmp.lt.s32.totalorder %v1009_v15, 17  ;;  %v1084_v51 = vrot.slane %v1015_v17, %v46_v34  ;;  %v1087_v52 = vrot.slane %v1021_v21, %v46_v34 }
   0x9   :  { %vm211_vm8 = vcmask 1042432   ;;  %vm214_vm9 = vcmask 1045504   ;;  %vm126_vm10 = vcmp.lt.s32.totalorder %v1009_v15, 113  ;;  %vm143_vm11 = vcmp.lt.s32.totalorder %v1009_v15, 112 }
   0xa   :  { %492 = vrot.lane.b32.xlu1 %v472_v3, %s895_s24  ;;  %490 = vrot.lane.b32.xlu0 %v954_v2, %s895_s24  ;;  %vm226_vm12 = vcmask 1041408   ;;  %vm160_vm13 = vcmp.lt.s32.totalorder %v1009_v15, 111  ;;  %vm229_vm14 = vcmask 1044480   ;;  %vm904_vm15 = vmmov 1  }
   0xe   :  { %500 = vrot.lane.b32.xlu1 %v472_v3, %s894_s23  ;;  %498 = vrot.lane.b32.xlu0 %v954_v2, %s894_s23 }
  0x12   :  { %56 = vrot.lane.b32.xlu1 %v33_v1, %s896_s27  ;;  %54 = vrot.lane.b32.xlu0 %v943_v0, %s896_s27 }
  0x16   :  { %484 = vrot.lane.b32.xlu1 %v472_v3, %s896_s27  ;;  %482 = vrot.lane.b32.xlu0 %v954_v2, %s896_s27 }
  0x1a   :  { %107 = vrot.lane.b32.xlu1 %v33_v1, %s897_s0  ;;  %105 = vrot.lane.b32.xlu0 %v943_v0, %s897_s0 }
  0x1e   :  { %508 = vrot.lane.b32.xlu1 %v472_v3, %s897_s0  ;;  %506 = vrot.lane.b32.xlu0 %v954_v2, %s897_s0 }
  0x22   :  { %37 = vrot.lane.b32.xlu1 %v33_v1, %s898_s28  ;;  %35 = vrot.lane.b32.xlu0 %v943_v0, %s898_s28 }
  0x26   :  { %476 = vrot.lane.b32.xlu1 %v472_v3, %s898_s28  ;;  %474 = vrot.lane.b32.xlu0 %v954_v2, %s898_s28 }
  0x2a   :  { %124 = vrot.lane.b32.xlu1 %v33_v1, %s899_s29  ;;  %122 = vrot.lane.b32.xlu0 %v943_v0, %s899_s29 }
  0x2e   :  { %516 = vrot.lane.b32.xlu1 %v472_v3, %s899_s29  ;;  %514 = vrot.lane.b32.xlu0 %v954_v2, %s899_s29 }
  0x32   :  { %141 = vrot.lane.b32.xlu1 %v33_v1, %s900_s30  ;;  %139 = vrot.lane.b32.xlu0 %v943_v0, %s900_s30 }
  0x36   :  { %524 = vrot.lane.b32.xlu1 %v472_v3, %s900_s30  ;;  %522 = vrot.lane.b32.xlu0 %v954_v2, %s900_s30 }
  0x3a   :  { %158 = vrot.lane.b32.xlu1 %v33_v1, %s902_s7  ;;  %156 = vrot.lane.b32.xlu0 %v943_v0, %s902_s7 }
  0x3e   :  { %532 = vrot.lane.b32.xlu1 %v472_v3, %s902_s7  ;;  %530 = vrot.lane.b32.xlu0 %v954_v2, %s902_s7 }
  0x42   :  { %234 = vperm.xlu0 %889, %v28_v6  }
  0x74   :  { %v89_v7 = vpop.permute.xlu1 %88  ;;  %v72_v8 = vpop.permute.xlu0 %71 }
  0x78   :  { %v91_v10 = vpop.permute.xlu1 %90  ;;  %v74_v11 = vpop.permute.xlu0 %73 }
  0x79   :  { %v93_v30 = vsel %vm92_vm0, %v89_v7, %v91_v10  ;;  %v94_v31 = vsel %vm92_vm0, %v91_v10, %v89_v7  ;;  %v76_v32 = vsel %vm75_vm1, %v72_v8, %v74_v11  ;;  %v77_v33 = vsel %vm75_vm1, %v74_v11, %v72_v8 }
  0x7a   :  { %v103_v37 = vmul.f32 %v1026_v22, %v94_v31  ;;  %v104_v38 = vmul.f32 %v1030_v24, %v93_v30  ;;  %v1056_v39 = vmul.f32 %v1033_v25, %v77_v33  ;;  %v1059_v40 = vmul.f32 %v1036_v26, %v76_v32 }
  0x7c   :  { %v493_v13 = vpop.permute.xlu1 %492  ;;  %v491_v14 = vpop.permute.xlu0 %490  ;;  %v187_v53 = vrot.slane %v103_v37, 7  ;;  %v188_v54 = vrot.slane %v104_v38, 7  ;;  %v181_v55 = vrot.slane %v1056_v39, 2  ;;  %v182_v56 = vrot.slane %v1059_v40, 2 }
  0x7d   :  { %v494_v49 = vsel %vm75_vm1, %v491_v14, %v493_v13  ;;  %v495_v50 = vsel %vm75_vm1, %v493_v13, %v491_v14 }
  0x7e   :  { %v1098_v63 = vmul.f32 %v495_v50, %v1033_v25  ;;  %v1101_v1 = vmul.f32 %v494_v49, %v1036_v26  ;;  %v219_v13 = vsel %vm217_vm2, %v182_v56, %v188_v54  ;;  %v218_v14 = vsel %vm217_vm2, %v181_v55, %v187_v53 }
  0x80   :  { %v501_v19 = vpop.permute.xlu1 %500  ;;  %v499_v20 = vpop.permute.xlu0 %498  ;;  %v546_v23 = vrot.slane %v1098_v63, 2 }
  0x81   :  { %v502_v46 = vsel %vm92_vm0, %v499_v20, %v501_v19  ;;  %v503_v47 = vsel %vm92_vm0, %v501_v19, %v499_v20 }
  0x82   :  { %v504_v59 = vmul.f32 %v503_v47, %v1026_v22  ;;  %v505_v60 = vmul.f32 %v502_v46, %v1030_v24 }
  0x84   :  { %v57_v27 = vpop.permute.xlu1 %56  ;;  %v55_v28 = vpop.permute.xlu0 %54  ;;  %v552_v16 = vrot.slane %v504_v59, 7  ;;  %v553_v18 = vrot.slane %v505_v60, 7 }
  0x85   :  { %v59_v3 = vsel %vm58_vm3, %v55_v28, %v57_v27  ;;  %v60_v5 = vsel %vm58_vm3, %v57_v27, %v55_v28  ;;  %v547_v27 = vrot.slane %v1101_v1, 2 }
  0x86   :  { %v69_v28 = vmul.f32 %v1062_v43, %v60_v5  ;;  %v70_v29 = vmul.f32 %v1065_v44, %v59_v3  ;;  %v580_v50 = vsel %vm217_vm2, %v546_v23, %v552_v16 }
  0x87   :  { %v581_v49 = vsel %vm217_vm2, %v547_v27, %v553_v18  ;;  %vm1255_vm2 = vmpackc.low %vm211_vm8, %vm904_vm15 }
  0x88   :  { %v485_v41 = vpop.permute.xlu1 %484  ;;  %v483_v42 = vpop.permute.xlu0 %482  ;;  %v175_v53 = vrot.slane %v69_v28, 5  ;;  %v176_v54 = vrot.slane %v70_v29, 5 }
  0x89   :  { %v486_v8 = vsel %vm58_vm3, %v483_v42, %v485_v41  ;;  %v487_v9 = vsel %vm58_vm3, %v485_v41, %v483_v42  ;;  %v222_v41 = vsel %vm220_vm5, %v219_v13, %v943_v0  ;;  %v221_v42 = vsel %vm220_vm5, %v218_v14, %v191_v35 }
  0x8a   :  { %v488_v30 = vmul.f32 %v487_v9, %v1062_v43  ;;  %v489_v31 = vmul.f32 %v486_v8, %v1065_v44 }
  0x8c   :  { %v108_v57 = vpop.permute.xlu1 %107  ;;  %v106_v58 = vpop.permute.xlu0 %105  ;;  %v540_v59 = vrot.slane %v488_v30, 5  ;;  %v541_v0 = vrot.slane %v489_v31, 5 }
  0x8d   :  { %v110_v61 = vsel %vm109_vm4, %v106_v58, %v108_v57  ;;  %v111_v62 = vsel %vm109_vm4, %v108_v57, %v106_v58 }
  0x8e   :  { %v1108_v6 = vmul.f32 %v1069_v45, %v110_v61  ;;  %v1111_v7 = vmul.f32 %v1076_v48, %v111_v62 }
  0x90   :  { %v509_v10 = vpop.permute.xlu1 %508  ;;  %v507_v11 = vpop.permute.xlu0 %506  ;;  %v195_v32 = vrot.slane %v1108_v6, 1  ;;  %v196_v33 = vrot.slane %v1111_v7, 1 }
  0x91   :  { %v510_v19 = vsel %vm109_vm4, %v507_v11, %v509_v10  ;;  %v511_v20 = vsel %vm109_vm4, %v509_v10, %v507_v11 }
  0x92   :  { %v1134_v34 = vmul.f32 %v510_v19, %v1069_v45  ;;  %v1137_v37 = vmul.f32 %v511_v20, %v1076_v48  ;;  %v225_v35 = vsel %vm223_vm7, %v222_v41, %v196_v33  ;;  %v224_v60 = vsel %vm223_vm7, %v221_v42, %v195_v32 }
  0x93   :  { %v131_v19 = vsub.s32 6, %v1007_v12 }
  0x94   :  { %v38_v38 = vpop.permute.xlu1 %37  ;;  %v36_v40 = vpop.permute.xlu0 %35  ;;  %v560_v61 = vrot.slane %v1134_v34, 1  ;;  %v561_v62 = vrot.slane %v1137_v37, 1  ;;  %v27_v34 = vld [vmem:[%s1473_s1] sm:$0xff] }
  0x95   :  { %v42_v46 = vsel %vm41_vm6, %v36_v40, %v38_v38  ;;  %v43_v47 = vsel %vm41_vm6, %v38_v38, %v36_v40 }
  0x96   :  { %v52_v57 = vmul.f32 %v1084_v51, %v43_v47  ;;  %v53_v58 = vmul.f32 %v1087_v52, %v42_v46  ;;  %v1196_v47 = vrot.slane %v1021_v21, %v131_v19 }
  0x98   :  { %v477_v63 = vpop.permute.xlu1 %476  ;;  %v475_v1 = vpop.permute.xlu0 %474  ;;  %v213_v3 = vsel %vm211_vm8, %v53_v58, %v176_v54  ;;  %v212_v5 = vsel %vm211_vm8, %v52_v57, %v175_v53 }
  0x99   :  { %v478_v8 = vsel %vm41_vm6, %v475_v1, %v477_v63  ;;  %v479_v9 = vsel %vm41_vm6, %v477_v63, %v475_v1  ;;  %v216_v10 = vsel %vm214_vm9, %v213_v3, %v182_v56  ;;  %v215_v11 = vsel %vm214_vm9, %v212_v5, %v181_v55 }
  0x9a   :  { %v480_v13 = vmul.f32 %v479_v9, %v1084_v51  ;;  %v481_v14 = vmul.f32 %v478_v8, %v1087_v52  ;;  %v826_v16 = vpack.c.bf16 %v225_v35, %v216_v10  ;;  %v828_v18 = vpack.c.bf16 %v224_v60, %v215_v11 }
  0x9b   :  { %v583_v56 = vsel %vm220_vm5, %v581_v49, %v954_v2  ;;  %v582_v55 = vsel %vm220_vm5, %v580_v50, %v556_v36  ;;  %v148_v2 = vsub.s32 7, %v1007_v12  ;;  %vm237_vm5 = vcmask 220160  }
  0x9c   :  { %v125_v20 = vpop.permute.xlu1 %124  ;;  %827 = vmatprep.subr.bf16.mxu1 %v826_v16  ;;  %v123_v28 = vpop.permute.xlu0 %122  ;;  %v577_v29 = vsel %vm211_vm8, %v481_v14, %v541_v0  ;;  %v576_v39 = vsel %vm211_vm8, %v480_v13, %v540_v59  ;;  %v585_v31 = vsel %vm223_vm7, %v583_v56, %v561_v62  ;;  %v584_v40 = vsel %vm223_vm7, %v582_v55, %v560_v61 }
  0x9d   :  { %829 = vmatpush1.bf16.msra.mxu1 %v828_v18  ;;  %v579_v30 = vsel %vm214_vm9, %v577_v29, %v547_v27  ;;  %v578_v38 = vsel %vm214_vm9, %v576_v39, %v546_v23  ;;  %v1193_v27 = vrot.slane %v1015_v17, %v131_v19  ;;  %v127_v23 = vsel %vm126_vm10, %v123_v28, %v125_v20  ;;  %v1233_v19 = vld [vmem:[%s1472_s5 + $0x10] ss:$0 sm:$0xff] }
  0x9e   :  { %v852_v41 = vpack.c.bf16 %v585_v31, %v579_v30  ;;  %v854_v42 = vpack.c.bf16 %v584_v40, %v578_v38  ;;  %v128_v49 = vsel %vm126_vm10, %v125_v20, %v123_v28  ;;  %v1204_v12 = vrot.slane %v1015_v17, %v148_v2  ;;  %v1238_v20 = vld [vmem:[%s1472_s5 + $0x18] ss:$0 sm:$0xff] }
  0x9f   :  { %v1207_v50 = vrot.slane %v1021_v21, %v148_v2  ;;  %v137_v57 = vmul.f32 %v1193_v27, %v127_v23  ;;  %v138_v58 = vmul.f32 %v1196_v47, %v128_v49 }
  0xa0   :  { %v517_v36 = vpop.permute.xlu1 %516  ;;  %853 = vmatprep.subr.bf16.mxu0 %v852_v41  ;;  %v515_v46 = vpop.permute.xlu0 %514 }
  0xa1   :  { %855 = vmatpush1.bf16.msra.mxu0 %v854_v42  ;;  %v518_v35 = vsel %vm126_vm10, %v515_v46, %v517_v36  ;;  %v519_v17 = vsel %vm126_vm10, %v517_v36, %v515_v46  ;;  %v201_v3 = vrot.slane %v137_v57, 6  ;;  %v202_v5 = vrot.slane %v138_v58, 6 }
  0xa2   :  { %v520_v10 = vmul.f32 %v518_v35, %v1193_v27  ;;  %v521_v11 = vmul.f32 %v519_v17, %v1196_v47 }
  0xa3   :  { %v227_v56 = vsel %vm226_vm12, %v195_v32, %v201_v3  ;;  %v228_v39 = vsel %vm226_vm12, %v196_v33, %v202_v5 }
  0xa4   :  { %v142_v53 = vpop.permute.xlu1 %141  ;;  %v140_v54 = vpop.permute.xlu0 %139  ;;  %v566_v31 = vrot.slane %v520_v10, 6  ;;  %v567_v38 = vrot.slane %v521_v11, 6 }
  0xa5   :  { %v144_v59 = vsel %vm143_vm11, %v140_v54, %v142_v53  ;;  %v145_v0 = vsel %vm143_vm11, %v142_v53, %v140_v54 }
  0xa6   :  { %v154_v21 = vmul.f32 %v1204_v12, %v144_v59  ;;  %v155_v60 = vmul.f32 %v1207_v50, %v145_v0  ;;  %v586_v54 = vsel %vm226_vm12, %v560_v61, %v566_v31  ;;  %v587_v57 = vsel %vm226_vm12, %v561_v62, %v567_v38 }
  0xa8   :  { %v525_v63 = vpop.permute.xlu1 %524  ;;  %v523_v1 = vpop.permute.xlu0 %522  ;;  %v207_v13 = vrot.slane %v154_v21, 3  ;;  %v208_v14 = vrot.slane %v155_v60, 3 }
  0xa9   :  { %v526_v8 = vsel %vm143_vm11, %v523_v1, %v525_v63  ;;  %v527_v9 = vsel %vm143_vm11, %v525_v63, %v523_v1 }
  0xaa   :  { %v528_v16 = vmul.f32 %v526_v8, %v1204_v12  ;;  %v529_v18 = vmul.f32 %v527_v9, %v1207_v50  ;;  %v230_v32 = vsel %vm229_vm14, %v227_v56, %v207_v13  ;;  %v231_v7 = vsel %vm229_vm14, %v228_v39, %v208_v14  ;;  %v30_v13 = vld [vmem:[%s1474_s4] sm:$0x7] }
  0xac   :  { %v159_v28 = vpop.permute.xlu1 %158  ;;  %v157_v29 = vpop.permute.xlu0 %156  ;;  %v572_v42 = vrot.slane %v528_v16, 3  ;;  %v573_v6 = vrot.slane %v529_v18, 3 }
  0xad   :  { %v161_v55 = vsel %vm160_vm13, %v157_v29, %v159_v28  ;;  %v162_v30 = vsel %vm160_vm13, %v159_v28, %v157_v29 }
  0xae   :  { %v171_v40 = vmul.f32 %v1233_v19, %v161_v55  ;;  %v172_v41 = vmul.f32 %v1238_v20, %v162_v30  ;;  %v588_v0 = vsel %vm229_vm14, %v586_v54, %v572_v42  ;;  %v589_v35 = vsel %vm229_vm14, %v587_v57, %v573_v6 }
  0xb0   :  { %v830_v2 = vpack.c.bf16 %v172_v41, %v231_v7  ;;  %v833_v36 = vpack.c.bf16 %v171_v40, %v230_v32  ;;  %v533_v46 = vpop.permute.xlu1 %532  ;;  %v531_v23 = vpop.permute.xlu0 %530 }
  0xb1   :  { %v534_v49 = vsel %vm160_vm13, %v531_v23, %v533_v46  ;;  %v535_v53 = vsel %vm160_vm13, %v533_v46, %v531_v23 }
  0xb2   :  { %v536_v58 = vmul.f32 %v1233_v19, %v534_v49  ;;  %v537_v59 = vmul.f32 %v1238_v20, %v535_v53  ;;  %832 = vmatprep.subr.msk.bf16.mxu1 %vm1255_vm2, %v830_v2 }
  0xb3   :  { %835 = vmatpush1.bf16.msk.msra.mxu1 %vm1255_vm2, %v833_v36 }
  0xb4   :  { %v856_v37 = vpack.c.bf16 %v537_v59, %v589_v35  ;;  %v859_v61 = vpack.c.bf16 %v536_v58, %v588_v0 }
  0xb6   :  { %818 = vmatmul.mubr.msk.f32.vlgmr.msra.gmra.mrb[0].mxu1 %vm237_vm5, %v27_v34  ;;  %858 = vmatprep.subr.msk.bf16.mxu0 %vm1255_vm2, %v856_v37 }
  0xb7   :  { %861 = vmatpush1.bf16.msk.msra.mxu0 %vm1255_vm2, %v859_v61  ;;  %457 = vmatprep.mubr.f32.mxu1 %v901_v4 }
  0xba   :  { %823 = vmatmul.mubr.msk.f32.vlgmr.msra.gmra.mrb[0].mxu0 %vm237_vm5, %v27_v34 }
  0xbb   :  { %797 = vmatprep.mubr.f32.mxu0 %v901_v4 }
  0xc1   :  { %v235_v62 = vpop.permute.xlu0 %234 }
 0x189   :  { %v313_v17 = vpop.f32.mrb[0].mxu1 }
 0x18a   :  { %v314_v21 = vadd.f32 %v313_v17, %v235_v62  ;;  %v315_v60 = vpop.f32.mrb[1].mxu1 }
 0x18b   :  { %v316_v1 = vadd.f32 %v315_v60, %v235_v62 }
 0x18c   :  { %v1286_v63 = vmax.f32 %v314_v21, 0.0 }
 0x18d   :  { %v662_v3 = vpop.f32.mrb[0].mxu0  ;;  %v1292_v9 = vmax.f32 %v316_v1, 0.0 }
 0x18e   :  { %v663_v5 = vadd.f32 %v662_v3, %v235_v62  ;;  %v664_v8 = vpop.f32.mrb[1].mxu0  ;;  %328 = vrot.lane.b32.xlu0 %v1286_v63, %s896_s27  ;;  %320 = vrot.lane.b32.xlu1 %v1286_v63, %s898_s28 }
 0x18f   :  { %v665_v4 = vadd.f32 %v664_v8, %v235_v62 }
 0x190   :  { %v1294_v10 = vmax.f32 %v663_v5, 0.0 }
 0x191   :  { %v1304_v11 = vmax.f32 %v665_v4, 0.0 }
 0x192   :  { %669 = vrot.lane.b32.xlu0 %v1294_v10, %s898_s28  ;;  %322 = vrot.lane.b32.xlu1 %v1292_v9, %s898_s28 }
 0x196   :  { %677 = vrot.lane.b32.xlu0 %v1294_v10, %s896_s27  ;;  %330 = vrot.lane.b32.xlu1 %v1292_v9, %s896_s27 }
 0x19a   :  { %336 = vrot.lane.b32.xlu0 %v1286_v63, %s895_s24  ;;  %671 = vrot.lane.b32.xlu1 %v1304_v11, %s898_s28 }
 0x19e   :  { %344 = vrot.lane.b32.xlu0 %v1286_v63, %s894_s23  ;;  %679 = vrot.lane.b32.xlu1 %v1304_v11, %s896_s27 }
 0x1a2   :  { %685 = vrot.lane.b32.xlu0 %v1294_v10, %s895_s24  ;;  %338 = vrot.lane.b32.xlu1 %v1292_v9, %s895_s24 }
 0x1a6   :  { %693 = vrot.lane.b32.xlu0 %v1294_v10, %s894_s23  ;;  %346 = vrot.lane.b32.xlu1 %v1292_v9, %s894_s23 }
 0x1aa   :  { %352 = vrot.lane.b32.xlu0 %v1286_v63, %s897_s0  ;;  %687 = vrot.lane.b32.xlu1 %v1304_v11, %s895_s24 }
 0x1ae   :  { %701 = vrot.lane.b32.xlu0 %v1294_v10, %s897_s0  ;;  %695 = vrot.lane.b32.xlu1 %v1304_v11, %s894_s23 }
 0x1b2   :  { %360 = vrot.lane.b32.xlu0 %v1286_v63, %s899_s29  ;;  %354 = vrot.lane.b32.xlu1 %v1292_v9, %s897_s0 }
 0x1b6   :  { %368 = vrot.lane.b32.xlu0 %v1286_v63, %s900_s30  ;;  %703 = vrot.lane.b32.xlu1 %v1304_v11, %s897_s0 }
 0x1ba   :  { %709 = vrot.lane.b32.xlu0 %v1294_v10, %s899_s29  ;;  %362 = vrot.lane.b32.xlu1 %v1292_v9, %s899_s29 }
 0x1be   :  { %717 = vrot.lane.b32.xlu0 %v1294_v10, %s900_s30  ;;  %370 = vrot.lane.b32.xlu1 %v1292_v9, %s900_s30 }
 0x1c2   :  { %376 = vrot.lane.b32.xlu0 %v1286_v63, %s902_s7  ;;  %711 = vrot.lane.b32.xlu1 %v1304_v11, %s899_s29 }
 0x1c6   :  { %725 = vrot.lane.b32.xlu0 %v1294_v10, %s902_s7  ;;  %719 = vrot.lane.b32.xlu1 %v1304_v11, %s900_s30 }
 0x1ca   :  { %386 = vperm.xlu0 %889, %v30_v13   ;;  %378 = vrot.lane.b32.xlu1 %v1292_v9, %s902_s7 }
 0x1ce   :  { %727 = vrot.lane.b32.xlu1 %v1304_v11, %s902_s7 }
 0x200   :  { %v329_v14 = vpop.permute.xlu0 %328  ;;  %v321_v16 = vpop.permute.xlu1 %320 }
 0x204   :  { %v670_v18 = vpop.permute.xlu0 %669  ;;  %v323_v28 = vpop.permute.xlu1 %322 }
 0x205   :  { %v324_v29 = vsel %vm41_vm6, %v321_v16, %v323_v28  ;;  %v325_v56 = vsel %vm41_vm6, %v323_v28, %v321_v16 }
 0x206   :  { %v326_v38 = vmul.f32 %v325_v56, %v1084_v51  ;;  %v327_v40 = vmul.f32 %v324_v29, %v1087_v52 }
 0x208   :  { %v678_v39 = vpop.permute.xlu0 %677  ;;  %v331_v55 = vpop.permute.xlu1 %330 }
 0x209   :  { %v332_v30 = vsel %vm58_vm3, %v329_v14, %v331_v55  ;;  %v333_v31 = vsel %vm58_vm3, %v331_v55, %v329_v14 }
 0x20a   :  { %v334_v41 = vmul.f32 %v333_v31, %v1062_v43  ;;  %v335_v42 = vmul.f32 %v332_v30, %v1065_v44 }
 0x20c   :  { %v838_v6 = vpack.c.bf16 %v334_v41, %v326_v38  ;;  %v337_v32 = vpop.permute.xlu0 %336  ;;  %v672_v7 = vpop.permute.xlu1 %671  ;;  %v836_v33 = vpack.c.bf16 %v335_v42, %v327_v40 }
 0x20d   :  { %v673_v2 = vsel %vm41_vm6, %v670_v18, %v672_v7  ;;  %v674_v36 = vsel %vm41_vm6, %v672_v7, %v670_v18 }
 0x20e   :  { %837 = vmatprep.subr.bf16.mxu1 %v836_v33  ;;  %v675_v54 = vmul.f32 %v674_v36, %v1084_v51  ;;  %v676_v57 = vmul.f32 %v673_v2, %v1087_v52 }
 0x20f   :  { %839 = vmatpush1.bf16.msra.mxu1 %v838_v6 }
 0x210   :  { %v345_v46 = vpop.permute.xlu0 %344  ;;  %v680_v23 = vpop.permute.xlu1 %679 }
 0x211   :  { %v681_v49 = vsel %vm58_vm3, %v678_v39, %v680_v23  ;;  %v682_v53 = vsel %vm58_vm3, %v680_v23, %v678_v39 }
 0x212   :  { %v683_v58 = vmul.f32 %v682_v53, %v1062_v43  ;;  %v684_v59 = vmul.f32 %v681_v49, %v1065_v44 }
 0x214   :  { %v864_v0 = vpack.c.bf16 %v683_v58, %v675_v54  ;;  %v686_v35 = vpop.permute.xlu0 %685  ;;  %v339_v34 = vpop.permute.xlu1 %338  ;;  %v862_v37 = vpack.c.bf16 %v684_v59, %v676_v57 }
 0x215   :  { %v340_v61 = vsel %vm75_vm1, %v337_v32, %v339_v34  ;;  %v341_v62 = vsel %vm75_vm1, %v339_v34, %v337_v32 }
 0x216   :  { %863 = vmatprep.subr.bf16.mxu0 %v862_v37  ;;  %v342_v44 = vmul.f32 %v341_v62, %v1033_v25  ;;  %v343_v21 = vmul.f32 %v340_v61, %v1036_v26 }
 0x217   :  { %865 = vmatpush1.bf16.msra.mxu0 %v864_v0 }
 0x218   :  { %v694_v17 = vpop.permute.xlu0 %693  ;;  %v347_v51 = vpop.permute.xlu1 %346 }
 0x219   :  { %v348_v52 = vsel %vm92_vm0, %v345_v46, %v347_v51  ;;  %v349_v43 = vsel %vm92_vm0, %v347_v51, %v345_v46 }
 0x21a   :  { %v350_v60 = vmul.f32 %v349_v43, %v1026_v22  ;;  %v351_v1 = vmul.f32 %v348_v52, %v1030_v24 }
 0x21c   :  { %v842_v3 = vpack.c.bf16 %v350_v60, %v342_v44  ;;  %v353_v5 = vpop.permute.xlu0 %352  ;;  %v688_v8 = vpop.permute.xlu1 %687  ;;  %v840_v4 = vpack.c.bf16 %v351_v1, %v343_v21 }
 0x21d   :  { %v689_v13 = vsel %vm75_vm1, %v686_v35, %v688_v8  ;;  %v690_v14 = vsel %vm75_vm1, %v688_v8, %v686_v35 }
 0x21e   :  { %841 = vmatprep.subr.bf16.mxu1 %v840_v4  ;;  %v691_v56 = vmul.f32 %v690_v14, %v1033_v25  ;;  %v692_v39 = vmul.f32 %v689_v13, %v1036_v26 }
 0x21f   :  { %843 = vmatpush1.bf16.msra.mxu1 %v842_v3 }
 0x220   :  { %v702_v16 = vpop.permute.xlu0 %701  ;;  %v696_v18 = vpop.permute.xlu1 %695 }
 0x221   :  { %v697_v28 = vsel %vm92_vm0, %v694_v17, %v696_v18  ;;  %v698_v29 = vsel %vm92_vm0, %v696_v18, %v694_v17  ;;  %vm389_vm0 = vcmask 588800  }
 0x222   :  { %v699_v55 = vmul.f32 %v698_v29, %v1026_v22  ;;  %v700_v30 = vmul.f32 %v697_v28, %v1030_v24 }
 0x224   :  { %v868_v31 = vpack.c.bf16 %v699_v55, %v691_v56  ;;  %v361_v38 = vpop.permute.xlu0 %360  ;;  %v355_v40 = vpop.permute.xlu1 %354  ;;  %v866_v41 = vpack.c.bf16 %v700_v30, %v692_v39 }
 0x225   :  { %v356_v42 = vsel %vm109_vm4, %v353_v5, %v355_v40  ;;  %v357_v6 = vsel %vm109_vm4, %v355_v40, %v353_v5 }
 0x226   :  { %v358_v32 = vmul.f32 %v356_v42, %v1069_v45  ;;  %v359_v25 = vmul.f32 %v357_v6, %v1076_v48  ;;  %867 = vmatprep.subr.bf16.mxu0 %v866_v41 }
 0x227   :  { %869 = vmatpush1.bf16.msra.mxu0 %v868_v31 }
 0x228   :  { %v846_v22 = vpack.c.bf16 %v358_v32, %v1286_v63  ;;  %v369_v26 = vpop.permute.xlu0 %368  ;;  %v704_v24 = vpop.permute.xlu1 %703  ;;  %v844_v7 = vpack.c.bf16 %v359_v25, %v1292_v9 }
 0x229   :  { %v705_v33 = vsel %vm109_vm4, %v702_v16, %v704_v24  ;;  %v706_v2 = vsel %vm109_vm4, %v704_v24, %v702_v16 }
 0x22a   :  { %v707_v36 = vmul.f32 %v705_v33, %v1069_v45  ;;  %v708_v46 = vmul.f32 %v706_v2, %v1076_v48  ;;  %845 = vmatprep.subr.bf16.mxu1 %v844_v7 }
 0x22b   :  { %847 = vmatpush1.bf16.msra.mxu1 %v846_v22 }
 0x22c   :  { %v872_v23 = vpack.c.bf16 %v707_v36, %v1294_v10  ;;  %v363_v49 = vpop.permute.xlu1 %362  ;;  %v870_v63 = vpack.c.bf16 %v708_v46, %v1304_v11  ;;  %v710_v53 = vpop.permute.xlu0 %709 }
 0x22d   :  { %v364_v9 = vsel %vm126_vm10, %v361_v38, %v363_v49  ;;  %v365_v54 = vsel %vm126_vm10, %v363_v49, %v361_v38 }
 0x22e   :  { %871 = vmatprep.subr.bf16.mxu0 %v870_v63  ;;  %v366_v10 = vmul.f32 %v364_v9, %v1193_v27  ;;  %v367_v11 = vmul.f32 %v365_v54, %v1196_v47 }
 0x22f   :  { %873 = vmatpush1.bf16.msra.mxu0 %v872_v23 }
 0x230   :  { %v371_v57 = vpop.permute.xlu1 %370  ;;  %v718_v0 = vpop.permute.xlu0 %717 }
 0x231   :  { %v372_v45 = vsel %vm143_vm11, %v369_v26, %v371_v57  ;;  %v373_v48 = vsel %vm143_vm11, %v371_v57, %v369_v26 }
 0x232   :  { %v374_v58 = vmul.f32 %v372_v45, %v1204_v12  ;;  %v375_v59 = vmul.f32 %v373_v48, %v1207_v50 }
 0x234   :  { %v850_v35 = vpack.c.bf16 %v374_v58, %v366_v10  ;;  %v712_v34 = vpop.permute.xlu1 %711  ;;  %v848_v37 = vpack.c.bf16 %v375_v59, %v367_v11  ;;  %v377_v43 = vpop.permute.xlu0 %376 }
 0x235   :  { %v713_v61 = vsel %vm126_vm10, %v710_v53, %v712_v34  ;;  %v714_v62 = vsel %vm126_vm10, %v712_v34, %v710_v53 }
 0x236   :  { %849 = vmatprep.subr.bf16.mxu1 %v848_v37  ;;  %v715_v44 = vmul.f32 %v713_v61, %v1193_v27  ;;  %v716_v21 = vmul.f32 %v714_v62, %v1196_v47  ;;  %v29_v27 = vld [vmem:[%s1475_s3] sm:$0x7] }
 0x237   :  { %851 = vmatpush1.bf16.msra.mxu1 %v850_v35 }
 0x238   :  { %v720_v17 = vpop.permute.xlu1 %719  ;;  %v726_v47 = vpop.permute.xlu0 %725 }
 0x239   :  { %v721_v51 = vsel %vm143_vm11, %v718_v0, %v720_v17  ;;  %v722_v52 = vsel %vm143_vm11, %v720_v17, %v718_v0 }
 0x23a   :  { %v723_v60 = vmul.f32 %v721_v51, %v1204_v12  ;;  %v724_v1 = vmul.f32 %v722_v52, %v1207_v50 }
 0x23c   :  { %v876_v3 = vpack.c.bf16 %v723_v60, %v715_v44  ;;  %v379_v5 = vpop.permute.xlu1 %378  ;;  %v874_v8 = vpack.c.bf16 %v724_v1, %v716_v21 }
 0x23d   :  { %v380_v4 = vsel %vm160_vm13, %v377_v43, %v379_v5  ;;  %v381_v13 = vsel %vm160_vm13, %v379_v5, %v377_v43 }
 0x23e   :  { %v382_v14 = vmul.f32 %v1233_v19, %v380_v4  ;;  %v383_v16 = vmul.f32 %v1238_v20, %v381_v13  ;;  %875 = vmatprep.subr.bf16.mxu0 %v874_v8 }
 0x23f   :  { %877 = vmatpush1.bf16.msra.mxu0 %v876_v3 }
 0x240   :  { %409 = vmatprep.subr.mxu1 %v383_v16  ;;  %v728_v12 = vpop.permute.xlu1 %727 }
 0x241   :  { %v729_v50 = vsel %vm160_vm13, %v726_v47, %v728_v12  ;;  %v730_v18 = vsel %vm160_vm13, %v728_v12, %v726_v47  ;;  %410 = vmatpush1.msra.mxu1 %v382_v14 }
 0x242   :  { %v731_v28 = vmul.f32 %v1233_v19, %v729_v50  ;;  %v732_v29 = vmul.f32 %v1238_v20, %v730_v18  ;;  %819 = vmatmul.mubr.msk.f32.vlgmr.msra.gmra.mrb[2].mxu1 %vm389_vm0, %v29_v27 }
 0x244   :  { %749 = vmatprep.subr.mxu0 %v732_v29 }
 0x245   :  { %750 = vmatpush1.msra.mxu0 %v731_v28 }
 0x246   :  { %824 = vmatmul.mubr.msk.f32.vlgmr.msra.gmra.mrb[2].mxu0 %vm389_vm0, %v29_v27 }
 0x249   :  { %v387_v56 = vpop.permute.xlu0 %386 }
 0x315   :  { %v459_v39 = vpop.f32.mrb[2].mxu1 }
 0x316   :  { %v460_v55 = vadd.f32 %v459_v39, %v387_v56  ;;  %v461_v30 = vpop.f32.mrb[3].mxu1 }
 0x317   :  { %v462_v31 = vadd.f32 %v461_v30, %v387_v56 }
 0x319   :  { %v466_v38 = vcombine.low %v460_v55, %v462_v31  ;;  %v799_v40 = vpop.f32.mrb[2].mxu0 }
 0x31a   :  { %v800_v41 = vadd.f32 %v799_v40, %v387_v56  ;;  %v801_v42 = vpop.f32.mrb[3].mxu0 }
 0x31b   :  { %468 = vst [vmem:[%s1476_s6] sm:$0x77] %v466_v38  ;;  %v802_v15 = vadd.f32 %v801_v42, %v387_v56 }
 0x31d   :  { %v806_v19 = vcombine.low %v800_v41, %v802_v15 }
 0x31f   :  { %825 = vst [vmem:[%s1476_s6 + $0x8] sm:$0x77] %v806_v19 }

</bundles_post_ra>
